<compile_context>
chip_gen: v7x
topology: tpu7x:2x2x1
jax: 0.10.0
libtpu: 0.0.40
codegen_flags: <defaults>
</compile_context>

<pallas_src>
import functools

import jax
import jax.numpy as jnp
import numpy as np
from jax.experimental import pallas as pl
from jax.experimental.pallas import tpu as pltpu

# Layer widths of the AlphaSlow NeuralNet MLP:
# n_in -> 160 -> 160 -> 80 -> 80 -> 40 -> 40 -> 20 -> 20 -> n_out
HIDDEN = (160, 160, 80, 80, 40, 40, 20, 20)
N_LAYERS = len(HIDDEN) + 1


def _round_up(x, m):
    return (x + m - 1) // m * m


def mlp_kernel(*refs):
    """Whole 9-layer MLP fused in a single Pallas kernel.

    refs = (x_ref, w_0..w_8, b_0..b_8, o_ref)
      x_ref : (batch_tile, 128)          f32  -- lane-padded input activations
      w_l   : (in_pad_l, out_pad_l)      bf16 -- per-layer zero-padded, pre-transposed
      b_l   : (1, out_pad_l)             f32  -- per-layer zero-padded bias
      o_ref : (batch_tile, 128)          f32  -- lane-dense padded output
    """
    x_ref = refs[0]
    o_ref = refs[-1]
    n_layers = (len(refs) - 2) // 2
    w_refs = refs[1:1 + n_layers]
    b_refs = refs[1 + n_layers:1 + 2 * n_layers]

    h = x_ref[...]                                    # (tile, 128) f32
    for layer in range(n_layers):                     # static unroll: 9 layers
        w = w_refs[layer][...]                        # (in_pad_l, out_pad_l) bf16
        b = b_refs[layer][...]                        # (1, out_pad_l) f32
        # bf16 MXU inputs (cast only at the MXU boundary; elementwise math stays f32
        # so v5e's bf16-less VPU lowers cleanly) with explicit f32 accumulation.
        z = jnp.dot(h.astype(jnp.bfloat16), w,
                    preferred_element_type=jnp.float32) + b
        if layer == n_layers - 1:
            h = jnp.tanh(z)                           # final layer: Tanh
        else:
            h = jnp.maximum(z, 0.0)                   # hidden layers: ReLU
        # h now already has the next layer's (narrow) padded width -- no global pad.
    o_ref[...] = h.astype(o_ref.dtype)


def pack_params(params):
    """Per-layer zero-padded, 128-aligned (in,out) bf16 weights and (1,out) f32 biases."""
    w_list, b_list = [], []
    for w_t, b in params:                             # w_t is (in_features, out_features)
        fi, fo = w_t.shape
        ip, op = _round_up(fi, 128), _round_up(fo, 128)
        wp = np.zeros((ip, op), np.float32)
        wp[:fi, :fo] = np.asarray(w_t, np.float32)
        bp = np.zeros((1, op), np.float32)
        bp[0, :fo] = np.asarray(b, np.float32).reshape(-1)
        w_list.append(jnp.asarray(wp, jnp.bfloat16))  # MXU input dtype
        b_list.append(jnp.asarray(bp, jnp.float32))
    return w_list, b_list


def _choose_batch_tile(batch, *, max_tile=1024):
    """Adaptive batch tile: no huge padding for tiny batches, >=2 tiles when possible
    (keeps both v7x TensorCores busy), capped at max_tile rows."""
    rows = _round_up(max(batch, 1), 8)
    if rows <= 16:
        return rows                                   # one small tile, no waste
    half = _round_up((rows + 1) // 2, 8)
    return min(max_tile, half)


def neural_net_forward(x, w_list, b_list, n_out, *, max_batch_tile=1024):
    """x: (B, n_in) float32. Returns (B, n_out) float32."""
    B, n_in = x.shape
    in_pad = w_list[0].shape[0]                       # 128 for n_in<=128
    out_pad = w_list[-1].shape[1]                     # 128 for n_out<=128
    assert n_in <= in_pad and n_out <= out_pad

    batch_tile = _choose_batch_tile(B, max_tile=max_batch_tile)
    b_pad = _round_up(max(B, 1), batch_tile)
    num_tiles = b_pad // batch_tile

    x_pad = jnp.pad(x.astype(jnp.float32),
                    ((0, b_pad - B), (0, in_pad - n_in)))

    # Activations: one (batch_tile, 128) tile per grid step.
    in_specs = [pl.BlockSpec((batch_tile, in_pad), lambda i: (i, 0))]
    # Params: full-array blocks with constant index maps -> DMA'd once, VMEM-resident
    # across all grid steps (total well under 1 MiB even double-buffered).
    for w in w_list:
        in_specs.append(pl.BlockSpec(w.shape, lambda i: (0, 0)))
    for b in b_list:
        in_specs.append(pl.BlockSpec(b.shape, lambda i: (0, 0)))

    out = pl.pallas_call(
        mlp_kernel,
        out_shape=jax.ShapeDtypeStruct((b_pad, out_pad), jnp.float32),
        grid_spec=pltpu.PrefetchScalarGridSpec(
            num_scalar_prefetch=0,
            grid=(num_tiles,),
            in_specs=in_specs,
            out_specs=pl.BlockSpec((batch_tile, out_pad), lambda i: (i, 0)),
        ),
        compiler_params=pltpu.CompilerParams(
            # batch-tile axis is independent -> shard across TensorCores on v7x
            dimension_semantics=("parallel",)),
    )(x_pad, *w_list, *b_list)
    return out[:B, :n_out]


def init_params(key, n_in, n_out):
    """Deterministic init mimicking nn.Linear default (uniform +/- 1/sqrt(fan_in)).

    Weights are stored already transposed: (in_features, out_features)."""
    dims = (n_in,) + HIDDEN + (n_out,)
    params = []
    for li in range(len(dims) - 1):
        fan_in, fan_out = dims[li], dims[li + 1]
        key, kw, kb = jax.random.split(key, 3)
        bound = 1.0 / np.sqrt(fan_in)
        w_t = jax.random.uniform(kw, (fan_in, fan_out), jnp.float32, -bound, bound)
        b = jax.random.uniform(kb, (fan_out,), jnp.float32, -bound, bound)
        params.append((w_t, b))
    return params


def reference_forward(x, params, *, mxu_dtype=None):
    """Pure-JAX reference. mxu_dtype=jnp.bfloat16 mimics the kernel's MXU input cast."""
    h = x.astype(jnp.float32)
    for i, (w, b) in enumerate(params):
        if mxu_dtype is not None:
            z = jnp.dot(h.astype(mxu_dtype), w.astype(mxu_dtype),
                        preferred_element_type=jnp.float32) + b
        else:
            z = h @ w + b
        h = jnp.tanh(z) if i == len(params) - 1 else jnp.maximum(z, 0.0)
    return h


if __name__ == "__main__":
    n_in, n_out = 32, 8

    key = jax.random.PRNGKey(0)
    key, kx_small, kx_big = jax.random.split(key, 3)
    params = init_params(key, n_in, n_out)
    w_list, b_list = pack_params(params)

    # Small-shape correctness check: batch=8 stays a single 8-row tile (no big pad).
    x_small = jax.random.normal(kx_small, (8, n_in), jnp.float32)
    out_small = jax.block_until_ready(
        neural_net_forward(x_small, w_list, b_list, n_out))
    assert out_small.shape == (8, n_out)
    ref_bf16 = jax.block_until_ready(
        reference_forward(x_small, params, mxu_dtype=jnp.bfloat16))
    ref_f32 = jax.block_until_ready(reference_forward(x_small, params))
    np.testing.assert_allclose(np.asarray(out_small), np.asarray(ref_bf16),
                               rtol=5e-3, atol=5e-3)
    np.testing.assert_allclose(np.asarray(out_small), np.asarray(ref_f32),
                               rtol=5e-2, atol=5e-2)

    # Larger batch exercises the adaptive tiling + 2-tile parallel grid (megacore path).
    x_big = jax.random.normal(kx_big, (1500, n_in), jnp.float32)
    out_big = jax.block_until_ready(
        neural_net_forward(x_big, w_list, b_list, n_out))
    assert out_big.shape == (1500, n_out)
    ref_big = jax.block_until_ready(
        reference_forward(x_big, params, mxu_dtype=jnp.bfloat16))
    np.testing.assert_allclose(np.asarray(out_big), np.asarray(ref_big),
                               rtol=5e-3, atol=5e-3)

    print("KERNEL_OK")
</pallas_src>

<mosaic_0001>
module attributes {stable_mosaic.version = 11 : i64} {
  func.func @mlp_kernel(%arg0: i32, %arg1: memref<8x128xf32, #tpu.memory_space<vmem>>, %arg2: memref<128x256xbf16, #tpu.memory_space<vmem>>, %arg3: memref<256x256xbf16, #tpu.memory_space<vmem>>, %arg4: memref<256x128xbf16, #tpu.memory_space<vmem>>, %arg5: memref<128x128xbf16, #tpu.memory_space<vmem>>, %arg6: memref<128x128xbf16, #tpu.memory_space<vmem>>, %arg7: memref<128x128xbf16, #tpu.memory_space<vmem>>, %arg8: memref<128x128xbf16, #tpu.memory_space<vmem>>, %arg9: memref<128x128xbf16, #tpu.memory_space<vmem>>, %arg10: memref<128x128xbf16, #tpu.memory_space<vmem>>, %arg11: memref<1x256xf32, #tpu.memory_space<vmem>>, %arg12: memref<1x256xf32, #tpu.memory_space<vmem>>, %arg13: memref<1x128xf32, #tpu.memory_space<vmem>>, %arg14: memref<1x128xf32, #tpu.memory_space<vmem>>, %arg15: memref<1x128xf32, #tpu.memory_space<vmem>>, %arg16: memref<1x128xf32, #tpu.memory_space<vmem>>, %arg17: memref<1x128xf32, #tpu.memory_space<vmem>>, %arg18: memref<1x128xf32, #tpu.memory_space<vmem>>, %arg19: memref<1x128xf32, #tpu.memory_space<vmem>>, %arg20: memref<8x128xf32, #tpu.memory_space<vmem>>) attributes {dimension_semantics = [#tpu.dimension_semantics<parallel>], iteration_bounds = array<i64: 1>, scalar_prefetch = 0 : i64, scratch_operands = 0 : i64, tpu.core_type = #tpu.core_type<tc>, window_params = [{transform_indices = @transform_0, window_bounds = array<i64: 8, 128>}, {pipeline_mode = #tpu.pipeline_mode<synchronous>, transform_indices = @transform_1, window_bounds = array<i64: 128, 256>}, {pipeline_mode = #tpu.pipeline_mode<synchronous>, transform_indices = @transform_2, window_bounds = array<i64: 256, 256>}, {pipeline_mode = #tpu.pipeline_mode<synchronous>, transform_indices = @transform_3, window_bounds = array<i64: 256, 128>}, {pipeline_mode = #tpu.pipeline_mode<synchronous>, transform_indices = @transform_4, window_bounds = array<i64: 128, 128>}, {pipeline_mode = #tpu.pipeline_mode<synchronous>, transform_indices = @transform_5, window_bounds = array<i64: 128, 128>}, {pipeline_mode = #tpu.pipeline_mode<synchronous>, transform_indices = @transform_6, window_bounds = array<i64: 128, 128>}, {pipeline_mode = #tpu.pipeline_mode<synchronous>, transform_indices = @transform_7, window_bounds = array<i64: 128, 128>}, {pipeline_mode = #tpu.pipeline_mode<synchronous>, transform_indices = @transform_8, window_bounds = array<i64: 128, 128>}, {pipeline_mode = #tpu.pipeline_mode<synchronous>, transform_indices = @transform_9, window_bounds = array<i64: 128, 128>}, {pipeline_mode = #tpu.pipeline_mode<synchronous>, transform_indices = @transform_10, window_bounds = array<i64: 1, 256>}, {pipeline_mode = #tpu.pipeline_mode<synchronous>, transform_indices = @transform_11, window_bounds = array<i64: 1, 256>}, {pipeline_mode = #tpu.pipeline_mode<synchronous>, transform_indices = @transform_12, window_bounds = array<i64: 1, 128>}, {pipeline_mode = #tpu.pipeline_mode<synchronous>, transform_indices = @transform_13, window_bounds = array<i64: 1, 128>}, {pipeline_mode = #tpu.pipeline_mode<synchronous>, transform_indices = @transform_14, window_bounds = array<i64: 1, 128>}, {pipeline_mode = #tpu.pipeline_mode<synchronous>, transform_indices = @transform_15, window_bounds = array<i64: 1, 128>}, {pipeline_mode = #tpu.pipeline_mode<synchronous>, transform_indices = @transform_16, window_bounds = array<i64: 1, 128>}, {pipeline_mode = #tpu.pipeline_mode<synchronous>, transform_indices = @transform_17, window_bounds = array<i64: 1, 128>}, {pipeline_mode = #tpu.pipeline_mode<synchronous>, transform_indices = @transform_18, window_bounds = array<i64: 1, 128>}, {transform_indices = @transform_19, window_bounds = array<i64: 8, 128>}]} {
    %c0 = arith.constant 0 : index
    %c0_0 = arith.constant 0 : index
    %0 = vector.load %arg1[%c0, %c0_0] : memref<8x128xf32, #tpu.memory_space<vmem>>, vector<8x128xf32>
    %c0_1 = arith.constant 0 : index
    %c0_2 = arith.constant 0 : index
    %1 = vector.load %arg2[%c0_1, %c0_2] : memref<128x256xbf16, #tpu.memory_space<vmem>>, vector<128x256xbf16>
    %c0_3 = arith.constant 0 : index
    %c0_4 = arith.constant 0 : index
    %2 = vector.load %arg11[%c0_3, %c0_4] : memref<1x256xf32, #tpu.memory_space<vmem>>, vector<1x256xf32>
    %3 = arith.truncf %0 : vector<8x128xf32> to vector<8x128xbf16>
    %cst = arith.constant dense<0.000000e+00> : vector<8x256xf32>
    %4 = tpu.matmul %3, %1, %cst {dimension_numbers = #tpu.dot_dimension_numbers<[1], [0], [0], [1], [0, 0, 1, 1], [], []>} : vector<8x128xbf16>, vector<128x256xbf16>, vector<8x256xf32> -> vector<8x256xf32>
    %5 = vector.broadcast %2 : vector<1x256xf32> to vector<8x256xf32>
    %6 = arith.addf %4, %5 : vector<8x256xf32>
    %cst_5 = arith.constant 0.000000e+00 : f32
    %7 = vector.broadcast %cst_5 : f32 to vector<8x256xf32>
    %8 = arith.maximumf %6, %7 : vector<8x256xf32>
    %c0_6 = arith.constant 0 : index
    %c0_7 = arith.constant 0 : index
    %9 = vector.load %arg3[%c0_6, %c0_7] : memref<256x256xbf16, #tpu.memory_space<vmem>>, vector<256x256xbf16>
    %c0_8 = arith.constant 0 : index
    %c0_9 = arith.constant 0 : index
    %10 = vector.load %arg12[%c0_8, %c0_9] : memref<1x256xf32, #tpu.memory_space<vmem>>, vector<1x256xf32>
    %11 = arith.truncf %8 : vector<8x256xf32> to vector<8x256xbf16>
    %cst_10 = arith.constant dense<0.000000e+00> : vector<8x256xf32>
    %12 = tpu.matmul %11, %9, %cst_10 {dimension_numbers = #tpu.dot_dimension_numbers<[1], [0], [0], [1], [0, 0, 1, 1], [], []>} : vector<8x256xbf16>, vector<256x256xbf16>, vector<8x256xf32> -> vector<8x256xf32>
    %13 = vector.broadcast %10 : vector<1x256xf32> to vector<8x256xf32>
    %14 = arith.addf %12, %13 : vector<8x256xf32>
    %cst_11 = arith.constant 0.000000e+00 : f32
    %15 = vector.broadcast %cst_11 : f32 to vector<8x256xf32>
    %16 = arith.maximumf %14, %15 : vector<8x256xf32>
    %c0_12 = arith.constant 0 : index
    %c0_13 = arith.constant 0 : index
    %17 = vector.load %arg4[%c0_12, %c0_13] : memref<256x128xbf16, #tpu.memory_space<vmem>>, vector<256x128xbf16>
    %c0_14 = arith.constant 0 : index
    %c0_15 = arith.constant 0 : index
    %18 = vector.load %arg13[%c0_14, %c0_15] : memref<1x128xf32, #tpu.memory_space<vmem>>, vector<1x128xf32>
    %19 = arith.truncf %16 : vector<8x256xf32> to vector<8x256xbf16>
    %cst_16 = arith.constant dense<0.000000e+00> : vector<8x128xf32>
    %20 = tpu.matmul %19, %17, %cst_16 {dimension_numbers = #tpu.dot_dimension_numbers<[1], [0], [0], [1], [0, 0, 1, 1], [], []>} : vector<8x256xbf16>, vector<256x128xbf16>, vector<8x128xf32> -> vector<8x128xf32>
    %21 = vector.broadcast %18 : vector<1x128xf32> to vector<8x128xf32>
    %22 = arith.addf %20, %21 : vector<8x128xf32>
    %cst_17 = arith.constant 0.000000e+00 : f32
    %23 = vector.broadcast %cst_17 : f32 to vector<8x128xf32>
    %24 = arith.maximumf %22, %23 : vector<8x128xf32>
    %c0_18 = arith.constant 0 : index
    %c0_19 = arith.constant 0 : index
    %25 = vector.load %arg5[%c0_18, %c0_19] : memref<128x128xbf16, #tpu.memory_space<vmem>>, vector<128x128xbf16>
    %c0_20 = arith.constant 0 : index
    %c0_21 = arith.constant 0 : index
    %26 = vector.load %arg14[%c0_20, %c0_21] : memref<1x128xf32, #tpu.memory_space<vmem>>, vector<1x128xf32>
    %27 = arith.truncf %24 : vector<8x128xf32> to vector<8x128xbf16>
    %cst_22 = arith.constant dense<0.000000e+00> : vector<8x128xf32>
    %28 = tpu.matmul %27, %25, %cst_22 {dimension_numbers = #tpu.dot_dimension_numbers<[1], [0], [0], [1], [0, 0, 1, 1], [], []>} : vector<8x128xbf16>, vector<128x128xbf16>, vector<8x128xf32> -> vector<8x128xf32>
    %29 = vector.broadcast %26 : vector<1x128xf32> to vector<8x128xf32>
    %30 = arith.addf %28, %29 : vector<8x128xf32>
    %cst_23 = arith.constant 0.000000e+00 : f32
    %31 = vector.broadcast %cst_23 : f32 to vector<8x128xf32>
    %32 = arith.maximumf %30, %31 : vector<8x128xf32>
    %c0_24 = arith.constant 0 : index
    %c0_25 = arith.constant 0 : index
    %33 = vector.load %arg6[%c0_24, %c0_25] : memref<128x128xbf16, #tpu.memory_space<vmem>>, vector<128x128xbf16>
    %c0_26 = arith.constant 0 : index
    %c0_27 = arith.constant 0 : index
    %34 = vector.load %arg15[%c0_26, %c0_27] : memref<1x128xf32, #tpu.memory_space<vmem>>, vector<1x128xf32>
    %35 = arith.truncf %32 : vector<8x128xf32> to vector<8x128xbf16>
    %cst_28 = arith.constant dense<0.000000e+00> : vector<8x128xf32>
    %36 = tpu.matmul %35, %33, %cst_28 {dimension_numbers = #tpu.dot_dimension_numbers<[1], [0], [0], [1], [0, 0, 1, 1], [], []>} : vector<8x128xbf16>, vector<128x128xbf16>, vector<8x128xf32> -> vector<8x128xf32>
    %37 = vector.broadcast %34 : vector<1x128xf32> to vector<8x128xf32>
    %38 = arith.addf %36, %37 : vector<8x128xf32>
    %cst_29 = arith.constant 0.000000e+00 : f32
    %39 = vector.broadcast %cst_29 : f32 to vector<8x128xf32>
    %40 = arith.maximumf %38, %39 : vector<8x128xf32>
    %c0_30 = arith.constant 0 : index
    %c0_31 = arith.constant 0 : index
    %41 = vector.load %arg7[%c0_30, %c0_31] : memref<128x128xbf16, #tpu.memory_space<vmem>>, vector<128x128xbf16>
    %c0_32 = arith.constant 0 : index
    %c0_33 = arith.constant 0 : index
    %42 = vector.load %arg16[%c0_32, %c0_33] : memref<1x128xf32, #tpu.memory_space<vmem>>, vector<1x128xf32>
    %43 = arith.truncf %40 : vector<8x128xf32> to vector<8x128xbf16>
    %cst_34 = arith.constant dense<0.000000e+00> : vector<8x128xf32>
    %44 = tpu.matmul %43, %41, %cst_34 {dimension_numbers = #tpu.dot_dimension_numbers<[1], [0], [0], [1], [0, 0, 1, 1], [], []>} : vector<8x128xbf16>, vector<128x128xbf16>, vector<8x128xf32> -> vector<8x128xf32>
    %45 = vector.broadcast %42 : vector<1x128xf32> to vector<8x128xf32>
    %46 = arith.addf %44, %45 : vector<8x128xf32>
    %cst_35 = arith.constant 0.000000e+00 : f32
    %47 = vector.broadcast %cst_35 : f32 to vector<8x128xf32>
    %48 = arith.maximumf %46, %47 : vector<8x128xf32>
    %c0_36 = arith.constant 0 : index
    %c0_37 = arith.constant 0 : index
    %49 = vector.load %arg8[%c0_36, %c0_37] : memref<128x128xbf16, #tpu.memory_space<vmem>>, vector<128x128xbf16>
    %c0_38 = arith.constant 0 : index
    %c0_39 = arith.constant 0 : index
    %50 = vector.load %arg17[%c0_38, %c0_39] : memref<1x128xf32, #tpu.memory_space<vmem>>, vector<1x128xf32>
    %51 = arith.truncf %48 : vector<8x128xf32> to vector<8x128xbf16>
    %cst_40 = arith.constant dense<0.000000e+00> : vector<8x128xf32>
    %52 = tpu.matmul %51, %49, %cst_40 {dimension_numbers = #tpu.dot_dimension_numbers<[1], [0], [0], [1], [0, 0, 1, 1], [], []>} : vector<8x128xbf16>, vector<128x128xbf16>, vector<8x128xf32> -> vector<8x128xf32>
    %53 = vector.broadcast %50 : vector<1x128xf32> to vector<8x128xf32>
    %54 = arith.addf %52, %53 : vector<8x128xf32>
    %cst_41 = arith.constant 0.000000e+00 : f32
    %55 = vector.broadcast %cst_41 : f32 to vector<8x128xf32>
    %56 = arith.maximumf %54, %55 : vector<8x128xf32>
    %c0_42 = arith.constant 0 : index
    %c0_43 = arith.constant 0 : index
    %57 = vector.load %arg9[%c0_42, %c0_43] : memref<128x128xbf16, #tpu.memory_space<vmem>>, vector<128x128xbf16>
    %c0_44 = arith.constant 0 : index
    %c0_45 = arith.constant 0 : index
    %58 = vector.load %arg18[%c0_44, %c0_45] : memref<1x128xf32, #tpu.memory_space<vmem>>, vector<1x128xf32>
    %59 = arith.truncf %56 : vector<8x128xf32> to vector<8x128xbf16>
    %cst_46 = arith.constant dense<0.000000e+00> : vector<8x128xf32>
    %60 = tpu.matmul %59, %57, %cst_46 {dimension_numbers = #tpu.dot_dimension_numbers<[1], [0], [0], [1], [0, 0, 1, 1], [], []>} : vector<8x128xbf16>, vector<128x128xbf16>, vector<8x128xf32> -> vector<8x128xf32>
    %61 = vector.broadcast %58 : vector<1x128xf32> to vector<8x128xf32>
    %62 = arith.addf %60, %61 : vector<8x128xf32>
    %cst_47 = arith.constant 0.000000e+00 : f32
    %63 = vector.broadcast %cst_47 : f32 to vector<8x128xf32>
    %64 = arith.maximumf %62, %63 : vector<8x128xf32>
    %c0_48 = arith.constant 0 : index
    %c0_49 = arith.constant 0 : index
    %65 = vector.load %arg10[%c0_48, %c0_49] : memref<128x128xbf16, #tpu.memory_space<vmem>>, vector<128x128xbf16>
    %c0_50 = arith.constant 0 : index
    %c0_51 = arith.constant 0 : index
    %66 = vector.load %arg19[%c0_50, %c0_51] : memref<1x128xf32, #tpu.memory_space<vmem>>, vector<1x128xf32>
    %67 = arith.truncf %64 : vector<8x128xf32> to vector<8x128xbf16>
    %cst_52 = arith.constant dense<0.000000e+00> : vector<8x128xf32>
    %68 = tpu.matmul %67, %65, %cst_52 {dimension_numbers = #tpu.dot_dimension_numbers<[1], [0], [0], [1], [0, 0, 1, 1], [], []>} : vector<8x128xbf16>, vector<128x128xbf16>, vector<8x128xf32> -> vector<8x128xf32>
    %69 = vector.broadcast %66 : vector<1x128xf32> to vector<8x128xf32>
    %70 = arith.addf %68, %69 : vector<8x128xf32>
    %71 = math.tanh %70 : vector<8x128xf32>
    %c0_53 = arith.constant 0 : index
    %c0_54 = arith.constant 0 : index
    %72 = vector.load %arg20[%c0_53, %c0_54] : memref<8x128xf32, #tpu.memory_space<vmem>>, vector<8x128xf32>
    tpu.vector_store %arg20[%c0_53, %c0_54], %71 {strides = array<i32>} : memref<8x128xf32, #tpu.memory_space<vmem>>, vector<8x128xf32>,
    return
  }
  func.func @transform_0(%arg0: i32) -> (i32, i32) {
    %c0_i32 = arith.constant 0 : i32
    %c0_i32_0 = arith.constant 0 : i32
    return %arg0, %c0_i32 : i32, i32
  }
  func.func @transform_1(%arg0: i32) -> (i32, i32) {
    %c0_i32 = arith.constant 0 : i32
    %c0_i32_0 = arith.constant 0 : i32
    %c0_i32_1 = arith.constant 0 : i32
    return %c0_i32, %c0_i32_0 : i32, i32
  }
  func.func @transform_2(%arg0: i32) -> (i32, i32) {
    %c0_i32 = arith.constant 0 : i32
    %c0_i32_0 = arith.constant 0 : i32
    %c0_i32_1 = arith.constant 0 : i32
    return %c0_i32, %c0_i32_0 : i32, i32
  }
  func.func @transform_3(%arg0: i32) -> (i32, i32) {
    %c0_i32 = arith.constant 0 : i32
    %c0_i32_0 = arith.constant 0 : i32
    %c0_i32_1 = arith.constant 0 : i32
    return %c0_i32, %c0_i32_0 : i32, i32
  }
  func.func @transform_4(%arg0: i32) -> (i32, i32) {
    %c0_i32 = arith.constant 0 : i32
    %c0_i32_0 = arith.constant 0 : i32
    %c0_i32_1 = arith.constant 0 : i32
    return %c0_i32, %c0_i32_0 : i32, i32
  }
  func.func @transform_5(%arg0: i32) -> (i32, i32) {
    %c0_i32 = arith.constant 0 : i32
    %c0_i32_0 = arith.constant 0 : i32
    %c0_i32_1 = arith.constant 0 : i32
    return %c0_i32, %c0_i32_0 : i32, i32
  }
  func.func @transform_6(%arg0: i32) -> (i32, i32) {
    %c0_i32 = arith.constant 0 : i32
    %c0_i32_0 = arith.constant 0 : i32
    %c0_i32_1 = arith.constant 0 : i32
    return %c0_i32, %c0_i32_0 : i32, i32
  }
  func.func @transform_7(%arg0: i32) -> (i32, i32) {
    %c0_i32 = arith.constant 0 : i32
    %c0_i32_0 = arith.constant 0 : i32
    %c0_i32_1 = arith.constant 0 : i32
    return %c0_i32, %c0_i32_0 : i32, i32
  }
  func.func @transform_8(%arg0: i32) -> (i32, i32) {
    %c0_i32 = arith.constant 0 : i32
    %c0_i32_0 = arith.constant 0 : i32
    %c0_i32_1 = arith.constant 0 : i32
    return %c0_i32, %c0_i32_0 : i32, i32
  }
  func.func @transform_9(%arg0: i32) -> (i32, i32) {
    %c0_i32 = arith.constant 0 : i32
    %c0_i32_0 = arith.constant 0 : i32
    %c0_i32_1 = arith.constant 0 : i32
    return %c0_i32, %c0_i32_0 : i32, i32
  }
  func.func @transform_10(%arg0: i32) -> (i32, i32) {
    %c0_i32 = arith.constant 0 : i32
    %c0_i32_0 = arith.constant 0 : i32
    %c0_i32_1 = arith.constant 0 : i32
    return %c0_i32, %c0_i32_0 : i32, i32
  }
  func.func @transform_11(%arg0: i32) -> (i32, i32) {
    %c0_i32 = arith.constant 0 : i32
    %c0_i32_0 = arith.constant 0 : i32
    %c0_i32_1 = arith.constant 0 : i32
    return %c0_i32, %c0_i32_0 : i32, i32
  }
  func.func @transform_12(%arg0: i32) -> (i32, i32) {
    %c0_i32 = arith.constant 0 : i32
    %c0_i32_0 = arith.constant 0 : i32
    %c0_i32_1 = arith.constant 0 : i32
    return %c0_i32, %c0_i32_0 : i32, i32
  }
  func.func @transform_13(%arg0: i32) -> (i32, i32) {
    %c0_i32 = arith.constant 0 : i32
    %c0_i32_0 = arith.constant 0 : i32
    %c0_i32_1 = arith.constant 0 : i32
    return %c0_i32, %c0_i32_0 : i32, i32
  }
  func.func @transform_14(%arg0: i32) -> (i32, i32) {
    %c0_i32 = arith.constant 0 : i32
    %c0_i32_0 = arith.constant 0 : i32
    %c0_i32_1 = arith.constant 0 : i32
    return %c0_i32, %c0_i32_0 : i32, i32
  }
  func.func @transform_15(%arg0: i32) -> (i32, i32) {
    %c0_i32 = arith.constant 0 : i32
    %c0_i32_0 = arith.constant 0 : i32
    %c0_i32_1 = arith.constant 0 : i32
    return %c0_i32, %c0_i32_0 : i32, i32
  }
  func.func @transform_16(%arg0: i32) -> (i32, i32) {
    %c0_i32 = arith.constant 0 : i32
    %c0_i32_0 = arith.constant 0 : i32
    %c0_i32_1 = arith.constant 0 : i32
    return %c0_i32, %c0_i32_0 : i32, i32
  }
  func.func @transform_17(%arg0: i32) -> (i32, i32) {
    %c0_i32 = arith.constant 0 : i32
    %c0_i32_0 = arith.constant 0 : i32
    %c0_i32_1 = arith.constant 0 : i32
    return %c0_i32, %c0_i32_0 : i32, i32
  }
  func.func @transform_18(%arg0: i32) -> (i32, i32) {
    %c0_i32 = arith.constant 0 : i32
    %c0_i32_0 = arith.constant 0 : i32
    %c0_i32_1 = arith.constant 0 : i32
    return %c0_i32, %c0_i32_0 : i32, i32
  }
  func.func @transform_19(%arg0: i32) -> (i32, i32) {
    %c0_i32 = arith.constant 0 : i32
    %c0_i32_0 = arith.constant 0 : i32
    return %arg0, %c0_i32 : i32, i32
  }
}

</mosaic_0001>

<bundles_post_ra>
// kernel: tpu_custom_call.1
= control target key start
LH: loop header
LB: loop body
LE: loop exit
PB: predicated region body
PF: predicated region fallthrough
CT: control target
= control target key end

     0   :  { %s2596_s0 = inlined_call_operand.hbm [shape: f32[8,128], index: 0, kind: input, shape index: {}]   ;;  %s2597_s1 = inlined_call_operand.hbm [shape: bf16[128,256], index: 1, kind: input, shape index: {}]   ;;  %s2598_s2 = inlined_call_operand.hbm [shape: bf16[256,256], index: 2, kind: input, shape index: {}]   ;;  %s2599_s3 = inlined_call_operand.hbm [shape: bf16[256,128], index: 3, kind: input, shape index: {}]   ;;  %s2600_s4 = inlined_call_operand.hbm [shape: bf16[128,128], index: 4, kind: input, shape index: {}]   ;;  %s2601_s5 = inlined_call_operand.hbm [shape: bf16[128,128], index: 5, kind: input, shape index: {}]   ;;  %s2602_s6 = inlined_call_operand.hbm [shape: bf16[128,128], index: 6, kind: input, shape index: {}]   ;;  %s2603_s7 = inlined_call_operand.hbm [shape: bf16[128,128], index: 7, kind: input, shape index: {}]   ;;  %s2604_s8 = inlined_call_operand.hbm [shape: bf16[128,128], index: 8, kind: input, shape index: {}]   ;;  %s2605_s9 = inlined_call_operand.hbm [shape: bf16[128,128], index: 9, kind: input, shape index: {}]   ;;  %s2606_s10 = inlined_call_operand.vmem [shape: f32[1,256], index: 10, kind: input, shape index: {}]   ;;  %s2607_s11 = inlined_call_operand.vmem [shape: f32[1,256], index: 11, kind: input, shape index: {}]   ;;  %s2608_s12 = inlined_call_operand.vmem [shape: f32[1,128], index: 12, kind: input, shape index: {}]   ;;  %s2609_s13 = inlined_call_operand.vmem [shape: f32[1,128], index: 13, kind: input, shape index: {}]   ;;  %s2610_s14 = inlined_call_operand.vmem [shape: f32[1,128], index: 14, kind: input, shape index: {}]   ;;  %s2611_s15 = inlined_call_operand.vmem [shape: f32[1,128], index: 15, kind: input, shape index: {}]   ;;  %s2612_s16 = inlined_call_operand.vmem [shape: f32[1,128], index: 16, kind: input, shape index: {}]   ;;  %s2613_s17 = inlined_call_operand.vmem [shape: f32[1,128], index: 17, kind: input, shape index: {}]   ;;  %s2614_s18 = inlined_call_operand.vmem [shape: f32[1,128], index: 18, kind: input, shape index: {}]   ;;  %s2615_s19 = inlined_call_operand.hbm [shape: f32[8,128], index: 19, kind: output, shape index: {}]  }
   0x1   :  { %2623 = sst [smem:[#allocation27_spill]] %s2596_s0 }
   0x2   :  { %2624 = sst [smem:[#allocation28_spill]] %s2597_s1 }
   0x3   :  { %2625 = sst [smem:[#allocation29_spill]] %s2598_s2 }
   0x4   :  { %2626 = sst [smem:[#allocation30_spill]] %s2599_s3 }
   0x5   :  { %2627 = sst [smem:[#allocation31_spill]] %s2614_s18 }
   0x6   :  { %2628 = sst [smem:[#allocation32_spill]] %s2615_s19 }
   0x7   :  { %24 = vsyncpa [#allocation3], 0 }
   0x8   :  { %25 = vsyncpa [#allocation6], 0 }
   0x9   :  { %26 = vsyncpa [#allocation9], 0 }
   0xa   :  { %27 = vsyncpa [#allocation12], 0 }
   0xb   :  { %28 = vsyncpa [#allocation15], 0 }
   0xc   :  { %29 = vsyncpa [#allocation18], 0 }
   0xd   :  { %30 = vsyncpa [#allocation4], 0  ;;  %s2204_s0 = smov [#allocation5]   ;;  %s2629_s1 = sld [smem:[#allocation28_spill]] }
   0xe   :  { %s46_s30 = sshll.u32 %s2204_s0, 4  ;;  %s47_s30 = int_to_ptr.vmem [resolvable:$true] %s46_s30 }
  0x13   :  { %s1948_s22 = scalar_lea.hbm %s2629_s1, 2048 }
  0x14   :  { %p1949_p0 = scmp.ne.s32.totalorder %s2629_s1, %s1948_s22  ;;  %p1952_p1 = scmp.lt.u32.totalorder %s1948_s22, %s2629_s1 }
  0x16   :  { %p1954_p2 = pnand %p1952_p1, %p1949_p0 }
  0x18   :  { %1957 = shalt.err (!%p1954_p2)
}
  0x19   :  { %s1958_s3 = scalar_lea.vmem %s47_s30, 2048  ;;  %p1963_p4 = scmp.lt.s32.totalorder %s47_s30, %s47_s30 }
  0x1a   :  { %p1959_p3 = scmp.ne.s32.totalorder %s47_s30, %s1958_s3  ;;  %p1964_p5 = scmp.lt.s32.totalorder %s1958_s3, %s1958_s3 }
  0x1c   :  { %p1965_p6 = por %p1964_p5, %p1963_p4 }
  0x1e   :  { %p1966_p7 = pnand %p1965_p6, %p1959_p3 }
  0x20   :  { %1969 = shalt.err (!%p1966_p7)
}
  0x21   :  { %s2621_s26 = smov 128   ;;  %s2622_s27 = smov 8  }
  0x22   :  { %52 = dma.hbm_to_vmem [thread:$0]  %s2629_s1, 2048, %s47_s30, [#allocation6], %s2621_s26, %s2621_s26, %s2622_s27  }
  0x23   :  { %s2207_s0 = smov [#allocation8]   ;;  %s2630_s2 = sld [smem:[#allocation30_spill]] }
  0x24   :  { %s70_s20 = sshll.u32 %s2207_s0, 4  ;;  %s71_s20 = int_to_ptr.vmem [resolvable:$true] %s70_s20 }
  0x29   :  { %s1970_s23 = scalar_lea.hbm %s2630_s2, 2048 }
  0x2a   :  { %p1971_p8 = scmp.ne.s32.totalorder %s2630_s2, %s1970_s23  ;;  %p1974_p9 = scmp.lt.u32.totalorder %s1970_s23, %s2630_s2 }
  0x2c   :  { %p1976_p10 = pnand %p1974_p9, %p1971_p8 }
  0x2e   :  { %1979 = shalt.err (!%p1976_p10)
}
  0x2f   :  { %s1980_s18 = scalar_lea.vmem %s71_s20, 2048  ;;  %p1985_p12 = scmp.lt.s32.totalorder %s71_s20, %s71_s20 }
  0x30   :  { %p1981_p11 = scmp.ne.s32.totalorder %s71_s20, %s1980_s18  ;;  %p1986_p13 = scmp.lt.s32.totalorder %s1980_s18, %s1980_s18 }
  0x32   :  { %p1987_p0 = por %p1986_p13, %p1985_p12 }
  0x34   :  { %p1988_p1 = pnand %p1987_p0, %p1981_p11 }
  0x36   :  { %1991 = shalt.err (!%p1988_p1)
}
  0x37   :  { %s2208_s30 = smov 64   ;;  %s2209_s1 = smov 4  }
  0x38   :  { %76 = dma.hbm_to_vmem [thread:$0]  %s2630_s2, 2048, %s71_s20, [#allocation9], %s2208_s30, %s2208_s30, %s2209_s1  }
  0x39   :  { %s2210_s19 = smov [#allocation11]   ;;  %s2211_s21 = smov [#allocation14]  }
  0x3a   :  { %s94_s0 = sshll.u32 %s2210_s19, 4  ;;  %s118_s22 = sshll.u32 %s2211_s21, 4  ;;  %s95_s0 = int_to_ptr.vmem [resolvable:$true] %s94_s0  ;;  %s2352_s22 = int_to_ptr.vmem [resolvable:$true] %s118_s22 }
  0x3b   :  { %s1992_s24 = scalar_lea.hbm %s2601_s5, 1024 }
  0x3c   :  { %p1993_p2 = scmp.ne.s32.totalorder %s2601_s5, %s1992_s24  ;;  %p1996_p3 = scmp.lt.u32.totalorder %s1992_s24, %s2601_s5 }
  0x3e   :  { %p1998_p4 = pnand %p1996_p3, %p1993_p2 }
  0x40   :  { %2001 = shalt.err (!%p1998_p4)
}
  0x41   :  { %s2002_s20 = scalar_lea.vmem %s95_s0, 1024  ;;  %p2007_p6 = scmp.lt.s32.totalorder %s95_s0, %s95_s0 }
  0x42   :  { %p2003_p5 = scmp.ne.s32.totalorder %s95_s0, %s2002_s20  ;;  %p2008_p7 = scmp.lt.s32.totalorder %s2002_s20, %s2002_s20 }
  0x44   :  { %p2009_p8 = por %p2008_p7, %p2007_p6 }
  0x46   :  { %p2010_p9 = pnand %p2009_p8, %p2003_p5 }
  0x48   :  { %2013 = shalt.err (!%p2010_p9)
}
  0x49   :  { %100 = dma.hbm_to_vmem [thread:$0]  %s2601_s5, 1024, %s95_s0, [#allocation12], %s2208_s30, %s2208_s30, %s2209_s1  }
  0x4a   :  { %s2014_s26 = scalar_lea.hbm %s2603_s7, 1024 }
  0x4b   :  { %p2015_p10 = scmp.ne.s32.totalorder %s2603_s7, %s2014_s26  ;;  %p2018_p11 = scmp.lt.u32.totalorder %s2014_s26, %s2603_s7 }
  0x4d   :  { %p2020_p12 = pnand %p2018_p11, %p2015_p10 }
  0x4f   :  { %2023 = shalt.err (!%p2020_p12)
}
  0x50   :  { %s2024_s24 = scalar_lea.vmem %s2352_s22, 1024  ;;  %p2029_p0 = scmp.lt.s32.totalorder %s2352_s22, %s2352_s22 }
  0x51   :  { %p2025_p13 = scmp.ne.s32.totalorder %s2352_s22, %s2024_s24  ;;  %p2030_p1 = scmp.lt.s32.totalorder %s2024_s24, %s2024_s24 }
  0x53   :  { %p2031_p2 = por %p2030_p1, %p2029_p0 }
  0x55   :  { %p2032_p3 = pnand %p2031_p2, %p2025_p13 }
  0x57   :  { %2035 = shalt.err (!%p2032_p3)
}
  0x58   :  { %124 = dma.hbm_to_vmem [thread:$0]  %s2603_s7, 1024, %s2352_s22, [#allocation15], %s2208_s30, %s2208_s30, %s2209_s1  }
  0x59   :  { %s2212_s25 = smov [#allocation2]   ;;  %s2213_s20 = smov [#allocation7]  }
  0x5a   :  { %s37_s3 = sshll.u32 %s2212_s25, 4  ;;  %s58_s2 = sshll.u32 %s2213_s20, 4  ;;  %s38_s3 = int_to_ptr.vmem [resolvable:$true] %s37_s3  ;;  %s2389_s2 = int_to_ptr.vmem [resolvable:$true] %s58_s2 }
  0x5b   :  { %s2631_s19 = sld [smem:[#allocation27_spill]] }
  0x61   :  { %s2036_s26 = scalar_lea.hbm %s2631_s19, 128 }
  0x62   :  { %p2037_p4 = scmp.ne.s32.totalorder %s2631_s19, %s2036_s26  ;;  %p2040_p5 = scmp.lt.u32.totalorder %s2036_s26, %s2631_s19 }
  0x64   :  { %p2042_p6 = pnand %p2040_p5, %p2037_p4 }
  0x66   :  { %2045 = shalt.err (!%p2042_p6)
}
  0x67   :  { %s2046_s7 = scalar_lea.vmem %s38_s3, 128  ;;  %p2051_p8 = scmp.lt.s32.totalorder %s38_s3, %s38_s3 }
  0x68   :  { %p2047_p7 = scmp.ne.s32.totalorder %s38_s3, %s2046_s7  ;;  %p2052_p9 = scmp.lt.s32.totalorder %s2046_s7, %s2046_s7 }
  0x6a   :  { %p2053_p10 = por %p2052_p9, %p2051_p8 }
  0x6c   :  { %p2054_p11 = pnand %p2053_p10, %p2047_p7 }
  0x6e   :  { %2057 = shalt.err (!%p2054_p11)
}
  0x6f   :  { %40 = dma.hbm_to_vmem [thread:$0]  %s2631_s19, 128, %s38_s3, [#allocation3]  }
  0x70   :  { %s2632_s25 = sld [smem:[#allocation29_spill]] }
  0x76   :  { %s2058_s20 = scalar_lea.hbm %s2632_s25, 4096 }
  0x77   :  { %p2059_p12 = scmp.ne.s32.totalorder %s2632_s25, %s2058_s20  ;;  %p2062_p13 = scmp.lt.u32.totalorder %s2058_s20, %s2632_s25 }
  0x79   :  { %p2064_p0 = pnand %p2062_p13, %p2059_p12 }
  0x7b   :  { %2067 = shalt.err (!%p2064_p0)
}
  0x7c   :  { %s2068_s21 = scalar_lea.vmem %s2389_s2, 4096  ;;  %p2073_p2 = scmp.lt.s32.totalorder %s2389_s2, %s2389_s2 }
  0x7d   :  { %p2069_p1 = scmp.ne.s32.totalorder %s2389_s2, %s2068_s21  ;;  %p2074_p3 = scmp.lt.s32.totalorder %s2068_s21, %s2068_s21 }
  0x7f   :  { %p2075_p4 = por %p2074_p3, %p2073_p2 }
  0x81   :  { %p2076_p5 = pnand %p2075_p4, %p2069_p1 }
  0x83   :  { %2079 = shalt.err (!%p2076_p5)
}
  0x84   :  { %s2633_s3 = smov 8   ;;  %s2634_s19 = smov 128  }
  0x85   :  { %64 = dma.hbm_to_vmem [thread:$0]  %s2632_s25, 4096, %s2389_s2, [#allocation6], %s2634_s19, %s2634_s19, %s2633_s3  }
  0x86   :  { %s2214_s7 = smov [#allocation10]   ;;  %s2215_s24 = smov [#allocation13]  }
  0x87   :  { %s82_s22 = sshll.u32 %s2214_s7, 4  ;;  %s106_s5 = sshll.u32 %s2215_s24, 4  ;;  %s83_s22 = int_to_ptr.vmem [resolvable:$true] %s82_s22  ;;  %s2423_s5 = int_to_ptr.vmem [resolvable:$true] %s106_s5 }
  0x88   :  { %s2080_s28 = scalar_lea.hbm %s2600_s4, 1024 }
  0x89   :  { %p2081_p6 = scmp.ne.s32.totalorder %s2600_s4, %s2080_s28  ;;  %p2084_p7 = scmp.lt.u32.totalorder %s2080_s28, %s2600_s4 }
  0x8b   :  { %p2086_p8 = pnand %p2084_p7, %p2081_p6 }
  0x8d   :  { %2089 = shalt.err (!%p2086_p8)
}
  0x8e   :  { %s2090_s2 = scalar_lea.vmem %s83_s22, 1024  ;;  %p2095_p10 = scmp.lt.s32.totalorder %s83_s22, %s83_s22 }
  0x8f   :  { %p2091_p9 = scmp.ne.s32.totalorder %s83_s22, %s2090_s2  ;;  %p2096_p11 = scmp.lt.s32.totalorder %s2090_s2, %s2090_s2 }
  0x91   :  { %p2097_p12 = por %p2096_p11, %p2095_p10 }
  0x93   :  { %p2098_p13 = pnand %p2097_p12, %p2091_p9 }
  0x95   :  { %2101 = shalt.err (!%p2098_p13)
}
  0x96   :  { %88 = dma.hbm_to_vmem [thread:$0]  %s2600_s4, 1024, %s83_s22, [#allocation9], %s2208_s30, %s2208_s30, %s2209_s1  }
  0x97   :  { %s2102_s23 = scalar_lea.hbm %s2602_s6, 1024 }
  0x98   :  { %p2103_p0 = scmp.ne.s32.totalorder %s2602_s6, %s2102_s23  ;;  %p2106_p1 = scmp.lt.u32.totalorder %s2102_s23, %s2602_s6 }
  0x9a   :  { %p2108_p2 = pnand %p2106_p1, %p2103_p0 }
  0x9c   :  { %2111 = shalt.err (!%p2108_p2)
}
  0x9d   :  { %s2112_s28 = scalar_lea.vmem %s2423_s5, 1024  ;;  %p2117_p4 = scmp.lt.s32.totalorder %s2423_s5, %s2423_s5 }
  0x9e   :  { %p2113_p3 = scmp.ne.s32.totalorder %s2423_s5, %s2112_s28  ;;  %p2118_p5 = scmp.lt.s32.totalorder %s2112_s28, %s2112_s28 }
  0xa0   :  { %p2119_p6 = por %p2118_p5, %p2117_p4 }
  0xa2   :  { %p2120_p7 = pnand %p2119_p6, %p2113_p3 }
  0xa4   :  { %2123 = shalt.err (!%p2120_p7)
}
  0xa5   :  { %112 = dma.hbm_to_vmem [thread:$0]  %s2602_s6, 1024, %s2423_s5, [#allocation12], %s2208_s30, %s2208_s30, %s2209_s1  }
  0xa6   :  { %s2216_s29 = smov [#allocation16]   ;;  %s2217_s27 = smov [#allocation17]  }
  0xa7   :  { %s130_s26 = sshll.u32 %s2216_s29, 4  ;;  %s142_s21 = sshll.u32 %s2217_s27, 4  ;;  %s131_s26 = int_to_ptr.vmem [resolvable:$true] %s130_s26  ;;  %s2460_s21 = int_to_ptr.vmem [resolvable:$true] %s142_s21 }
  0xa8   :  { %s2124_s3 = scalar_lea.hbm %s2604_s8, 1024 }
  0xa9   :  { %p2125_p8 = scmp.ne.s32.totalorder %s2604_s8, %s2124_s3  ;;  %p2128_p9 = scmp.lt.u32.totalorder %s2124_s3, %s2604_s8 }
  0xab   :  { %p2130_p10 = pnand %p2128_p9, %p2125_p8 }
  0xad   :  { %2133 = shalt.err (!%p2130_p10)
}
  0xae   :  { %s2134_s6 = scalar_lea.vmem %s131_s26, 1024  ;;  %p2139_p12 = scmp.lt.s32.totalorder %s131_s26, %s131_s26 }
  0xaf   :  { %p2135_p11 = scmp.ne.s32.totalorder %s131_s26, %s2134_s6  ;;  %p2140_p13 = scmp.lt.s32.totalorder %s2134_s6, %s2134_s6 }
  0xb1   :  { %p2141_p0 = por %p2140_p13, %p2139_p12 }
  0xb3   :  { %p2142_p1 = pnand %p2141_p0, %p2135_p11 }
  0xb5   :  { %2145 = shalt.err (!%p2142_p1)
}
  0xb6   :  { %136 = dma.hbm_to_vmem [thread:$0]  %s2604_s8, 1024, %s131_s26, [#allocation15], %s2208_s30, %s2208_s30, %s2209_s1  }
  0xb7   :  { %s2146_s28 = scalar_lea.hbm %s2605_s9, 1024 }
  0xb8   :  { %p2147_p2 = scmp.ne.s32.totalorder %s2605_s9, %s2146_s28  ;;  %p2150_p3 = scmp.lt.u32.totalorder %s2146_s28, %s2605_s9 }
  0xba   :  { %p2152_p4 = pnand %p2150_p3, %p2147_p2 }
  0xbc   :  { %2155 = shalt.err (!%p2152_p4)
}
  0xbd   :  { %s2156_s2 = scalar_lea.vmem %s2460_s21, 1024  ;;  %p2161_p6 = scmp.lt.s32.totalorder %s2460_s21, %s2460_s21 }
  0xbe   :  { %p2157_p5 = scmp.ne.s32.totalorder %s2460_s21, %s2156_s2  ;;  %p2162_p7 = scmp.lt.s32.totalorder %s2156_s2, %s2156_s2 }
  0xc0   :  { %p2163_p8 = por %p2162_p7, %p2161_p6 }
  0xc2   :  { %p2164_p9 = pnand %p2163_p8, %p2157_p5 }
  0xc4   :  { %2167 = shalt.err (!%p2164_p9)
}
  0xc5   :  { %148 = dma.hbm_to_vmem [thread:$0]  %s2605_s9, 1024, %s2460_s21, [#allocation18], %s2208_s30, %s2208_s30, %s2209_s1  }
  0xc6   :  { %2190 = dma.done.wait [#allocation3], 128  }
  0xc7   :  { %2191 = vsyncadd [#allocation3], 4294967168 }
  0xc8   :  { %2192 = dma.done.wait [#allocation6], 6144  }
  0xc9   :  { %2193 = vsyncadd [#allocation6], 4294961152 }
  0xca   :  { %2194 = dma.done.wait [#allocation9], 3072  }
  0xcb   :  { %2195 = vsyncadd [#allocation9], 4294964224 }
  0xcc   :  { %2196 = dma.done.wait [#allocation12], 2048  }
  0xcd   :  { %2197 = vsyncadd [#allocation12], 4294965248 }
  0xce   :  { %2198 = dma.done.wait [#allocation15], 2048  }
  0xcf   :  { %2199 = vsyncadd [#allocation15], 4294965248 }
  0xd0   :  { %2200 = dma.done.wait [#allocation18], 1024  }
  0xd1   :  { %2201 = vsyncadd [#allocation18], 4294966272  ;;  %v2218_v0 = vmov 0   ;;  %v1810_v1 = vld [vmem:[#allocation5 + $0x4] ss:$8 sps:$4 sm:$0xff]   ;;  %v198_v26 = vld [vmem:[#allocation2] sm:$0xff]  ;;  %v218_v63 = vlaneseq }
  0xd2   :  { %340 = vmatprep.mubr.bf16.mxu0 %v2218_v0  ;;  %v1812_v2 = vld [vmem:[#allocation5] ss:$8 sps:$4 sm:$0xff]   ;;  %308 = vmatprep.subr.bf16.mxu0 %v1810_v1  ;;  %v1813_v3 = vld [vmem:[#allocation5 + $0x14] ss:$8 sps:$4 sm:$0xff]   ;;  %v1815_v4 = vld [vmem:[#allocation5 + $0x10] ss:$8 sps:$4 sm:$0xff]   ;;  %v216_v31 = vpack.c.bf16 %v198_v26, %v198_v26 }
  0xd3   :  { %309 = vmatpush1.bf16.msra.mxu0 %v1812_v2  ;;  %v1816_v5 = vld [vmem:[#allocation5 + $0x24] ss:$8 sps:$4 sm:$0xff]   ;;  %v1818_v6 = vld [vmem:[#allocation5 + $0x20] ss:$8 sps:$4 sm:$0xff]   ;;  %v1819_v7 = vld [vmem:[#allocation5 + $0x34] ss:$8 sps:$4 sm:$0xff]  }
  0xd4   :  { %310 = vmatprep.subr.bf16.mxu0 %v1813_v3  ;;  %v1821_v8 = vld [vmem:[#allocation5 + $0x30] ss:$8 sps:$4 sm:$0xff]   ;;  %v1822_v9 = vld [vmem:[#allocation5 + $0x44] ss:$8 sps:$4 sm:$0xff]   ;;  %v1836_v11 = vld [vmem:[#allocation7] ss:$8 sps:$4 sm:$0xff]  }
  0xd5   :  { %v1834_v10 = vld [vmem:[#allocation7 + $0x4] ss:$8 sps:$4 sm:$0xff]   ;;  %v1837_v12 = vld [vmem:[#allocation7 + $0x14] ss:$8 sps:$4 sm:$0xff]   ;;  %v1824_v13 = vld [vmem:[#allocation5 + $0x40] ss:$8 sps:$4 sm:$0xff]  }
  0xd6   :  { %557 = vmatprep.subr.bf16.mxu1 %v1834_v10  ;;  %v1839_v14 = vld [vmem:[#allocation7 + $0x10] ss:$8 sps:$4 sm:$0xff]   ;;  %v1840_v15 = vld [vmem:[#allocation7 + $0x24] ss:$8 sps:$4 sm:$0xff]   ;;  %v1825_v16 = vld [vmem:[#allocation5 + $0x54] ss:$8 sps:$4 sm:$0xff]  }
  0xd7   :  { %311 = vmatpush1.bf16.msra.mxu0 %v1815_v4  ;;  %558 = vmatpush1.bf16.msra.mxu1 %v1836_v11  ;;  %v1827_v17 = vld [vmem:[#allocation5 + $0x50] ss:$8 sps:$4 sm:$0xff]   ;;  %v1842_v18 = vld [vmem:[#allocation7 + $0x20] ss:$8 sps:$4 sm:$0xff]   ;;  %v1843_v19 = vld [vmem:[#allocation7 + $0x34] ss:$8 sps:$4 sm:$0xff]  }
  0xd8   :  { %312 = vmatprep.subr.bf16.mxu0 %v1816_v5  ;;  %559 = vmatprep.subr.bf16.mxu1 %v1837_v12  ;;  %v1828_v20 = vld [vmem:[#allocation5 + $0x64] ss:$8 sps:$4 sm:$0xff]   ;;  %v1830_v21 = vld [vmem:[#allocation5 + $0x60] ss:$8 sps:$4 sm:$0xff]   ;;  %v1845_v22 = vld [vmem:[#allocation7 + $0x30] ss:$8 sps:$4 sm:$0xff]  }
  0xd9   :  { %v1846_v23 = vld [vmem:[#allocation7 + $0x44] ss:$8 sps:$4 sm:$0xff]   ;;  %v1831_v24 = vld [vmem:[#allocation5 + $0x74] ss:$8 sps:$4 sm:$0xff]   ;;  %v1833_v25 = vld [vmem:[#allocation5 + $0x70] ss:$8 sps:$4 sm:$0xff]  }
  0xda   :  { %v1848_v27 = vld [vmem:[#allocation7 + $0x40] ss:$8 sps:$4 sm:$0xff]   ;;  %v1849_v28 = vld [vmem:[#allocation7 + $0x54] ss:$8 sps:$4 sm:$0xff]   ;;  %v1851_v29 = vld [vmem:[#allocation7 + $0x50] ss:$8 sps:$4 sm:$0xff]  }
  0xdb   :  { %313 = vmatpush1.bf16.msra.mxu0 %v1818_v6  ;;  %560 = vmatpush1.bf16.msra.mxu1 %v1839_v14  ;;  %v1852_v30 = vld [vmem:[#allocation7 + $0x64] ss:$8 sps:$4 sm:$0xff]   ;;  %v1854_v32 = vld [vmem:[#allocation7 + $0x60] ss:$8 sps:$4 sm:$0xff]   ;;  %v1855_v33 = vld [vmem:[#allocation7 + $0x74] ss:$8 sps:$4 sm:$0xff]  }
  0xdc   :  { %314 = vmatprep.subr.bf16.mxu0 %v1819_v7  ;;  %561 = vmatprep.subr.bf16.mxu1 %v1840_v15  ;;  %v1857_v34 = vld [vmem:[#allocation7 + $0x70] ss:$8 sps:$4 sm:$0xff]   ;;  %v1858_v35 = vld [vmem:[#allocation7 + $0x84] ss:$8 sps:$4 sm:$0xff]   ;;  %v1860_v36 = vld [vmem:[#allocation7 + $0x80] ss:$8 sps:$4 sm:$0xff]  }
  0xdd   :  { %v1861_v37 = vld [vmem:[#allocation7 + $0x94] ss:$8 sps:$4 sm:$0xff]   ;;  %v1863_v38 = vld [vmem:[#allocation7 + $0x90] ss:$8 sps:$4 sm:$0xff]   ;;  %v1864_v39 = vld [vmem:[#allocation7 + $0xa4] ss:$8 sps:$4 sm:$0xff]  }
  0xde   :  { %v1866_v40 = vld [vmem:[#allocation7 + $0xa0] ss:$8 sps:$4 sm:$0xff]   ;;  %v1867_v41 = vld [vmem:[#allocation7 + $0xb4] ss:$8 sps:$4 sm:$0xff]   ;;  %v1869_v42 = vld [vmem:[#allocation7 + $0xb0] ss:$8 sps:$4 sm:$0xff]  }
  0xdf   :  { %315 = vmatpush1.bf16.msra.mxu0 %v1821_v8  ;;  %562 = vmatpush1.bf16.msra.mxu1 %v1842_v18  ;;  %v1870_v43 = vld [vmem:[#allocation7 + $0xc4] ss:$8 sps:$4 sm:$0xff]   ;;  %v1872_v44 = vld [vmem:[#allocation7 + $0xc0] ss:$8 sps:$4 sm:$0xff]   ;;  %v1873_v45 = vld [vmem:[#allocation7 + $0xd4] ss:$8 sps:$4 sm:$0xff]  }
  0xe0   :  { %316 = vmatprep.subr.bf16.mxu0 %v1822_v9  ;;  %563 = vmatprep.subr.bf16.mxu1 %v1843_v19  ;;  %v1875_v46 = vld [vmem:[#allocation7 + $0xd0] ss:$8 sps:$4 sm:$0xff]   ;;  %v1876_v47 = vld [vmem:[#allocation7 + $0xe4] ss:$8 sps:$4 sm:$0xff]   ;;  %v1878_v48 = vld [vmem:[#allocation7 + $0xe0] ss:$8 sps:$4 sm:$0xff]  }
  0xe1   :  { %v1879_v49 = vld [vmem:[#allocation7 + $0xf4] ss:$8 sps:$4 sm:$0xff]   ;;  %v1881_v50 = vld [vmem:[#allocation7 + $0xf0] ss:$8 sps:$4 sm:$0xff]   ;;  %v1882_v51 = vld [vmem:[#allocation8 + $0x40] sm:$0xff]   ;;  %v219_v0 = vshrl.u32 %v218_v63, 7 }
  0xe2   :  { %v1883_v52 = vld [vmem:[#allocation8] sm:$0xff]   ;;  %v1884_v53 = vld [vmem:[#allocation8 + $0x48] sm:$0xff]   ;;  %v1886_v55 = vld [vmem:[#allocation8 + $0x50] sm:$0xff]   ;;  %vm2220_vm0 = vmmov 0   ;;  %s2635_s5 = sld [smem:[#allocation31_spill]]  ;;  %s2221_s24 = smov [#allocation19]  }
  0xe3   :  { %317 = vmatpush1.bf16.msra.mxu0 %v1824_v13  ;;  %564 = vmatpush1.bf16.msra.mxu1 %v1845_v22  ;;  %v1885_v54 = vld [vmem:[#allocation8 + $0x8] sm:$0xff]   ;;  %v1887_v56 = vld [vmem:[#allocation8 + $0x10] sm:$0xff]   ;;  %v1888_v57 = vld [vmem:[#allocation8 + $0x58] sm:$0xff]   ;;  %v220_v1 = vsub.s32 0, %v219_v0  ;;  %v224_v3 = vsub.s32 1, %v219_v0 }
  0xe4   :  { %318 = vmatprep.subr.bf16.mxu0 %v1825_v16  ;;  %565 = vmatprep.subr.bf16.mxu1 %v1846_v23  ;;  %v1889_v58 = vld [vmem:[#allocation8 + $0x18] sm:$0xff]   ;;  %v1890_v59 = vld [vmem:[#allocation8 + $0x60] sm:$0xff]   ;;  %v1892_v61 = vld [vmem:[#allocation8 + $0x68] sm:$0xff]  }
  0xe5   :  { %v1891_v60 = vld [vmem:[#allocation8 + $0x20] sm:$0xff]   ;;  %v1893_v62 = vld [vmem:[#allocation8 + $0x28] sm:$0xff]   ;;  %v215_v2 = vld [vmem:[%s2606_s10] sm:$0x3] }
  0xe6   :  { %v221_v4 = vrot.slane %v215_v2, %v220_v1  ;;  %v225_v5 = vrot.slane %v215_v2, %v224_v3  ;;  %v1894_v16 = vld [vmem:[#allocation8 + $0x70] sm:$0xff]   ;;  %v1896_v18 = vld [vmem:[#allocation8 + $0x78] sm:$0xff]   ;;  %v1918_v63 = vld [vmem:[#allocation13 + $0x20] sm:$0xff]  }
  0xe7   :  { %319 = vmatpush1.bf16.msra.mxu0 %v1827_v17  ;;  %566 = vmatpush1.bf16.msra.mxu1 %v1848_v27  ;;  %v1895_v17 = vld [vmem:[#allocation8 + $0x30] sm:$0xff]   ;;  %v1897_v19 = vld [vmem:[#allocation8 + $0x38] sm:$0xff]   ;;  %v1919_v0 = vld [vmem:[#allocation13 + $0x28] sm:$0xff]  }
  0xe8   :  { %320 = vmatprep.subr.bf16.mxu0 %v1828_v20  ;;  %567 = vmatprep.subr.bf16.mxu1 %v1849_v28  ;;  %v2219_v20 = vmov 0.0  }
  0xeb   :  { %321 = vmatpush1.bf16.msra.mxu0 %v1830_v21  ;;  %568 = vmatpush1.bf16.msra.mxu1 %v1851_v29  ;;  %v383_v21 = vld [vmem:[%s2607_s11] sm:$0x3] }
  0xec   :  { %322 = vmatprep.subr.bf16.mxu0 %v1831_v24  ;;  %569 = vmatprep.subr.bf16.mxu1 %v1852_v30  ;;  %v390_v22 = vrot.slane %v383_v21, %v220_v1  ;;  %v394_v23 = vrot.slane %v383_v21, %v224_v3  ;;  %v1542_v1 = vld [vmem:[%s2609_s13] ss:$0 sm:$0xff] }
  0xef   :  { %323 = vmatpush1.bf16.msra.mxu0 %v1833_v25  ;;  %570 = vmatpush1.bf16.msra.mxu1 %v1854_v32 }
  0xf0   :  { %571 = vmatprep.subr.bf16.mxu1 %v1855_v33  ;;  %1596 = vmatprep.subr.bf16.mxu0 %v1882_v51  ;;  %v1898_v33 = vld [vmem:[#allocation10] sm:$0xff]  }
  0xf2   :  { %341 = vmatmul.mubr.bf16.vlgmr.msra.gmra.mrb[0].mxu0 %v216_v31 }
  0xf3   :  { %572 = vmatpush1.bf16.msra.mxu1 %v1857_v34  ;;  %1597 = vmatpush3.bf16.msra.mxu0 %v1883_v52 }
  0xf4   :  { %573 = vmatprep.subr.bf16.mxu1 %v1858_v35  ;;  %1598 = vmatprep.subr.bf16.mxu0 %v1884_v53  ;;  %v1899_v35 = vld [vmem:[#allocation10 + $0x8] sm:$0xff]  }
  0xf7   :  { %574 = vmatpush1.bf16.msra.mxu1 %v1860_v36  ;;  %1599 = vmatpush3.bf16.msra.mxu0 %v1885_v54  ;;  %v1900_v36 = vld [vmem:[#allocation10 + $0x10] sm:$0xff]  }
  0xf8   :  { %575 = vmatprep.subr.bf16.mxu1 %v1861_v37  ;;  %1600 = vmatprep.subr.bf16.mxu0 %v1886_v55  ;;  %v1901_v37 = vld [vmem:[#allocation10 + $0x18] sm:$0xff]  }
  0xfb   :  { %576 = vmatpush1.bf16.msra.mxu1 %v1863_v38  ;;  %1601 = vmatpush3.bf16.msra.mxu0 %v1887_v56  ;;  %v1902_v38 = vld [vmem:[#allocation10 + $0x20] sm:$0xff]  }
  0xfc   :  { %577 = vmatprep.subr.bf16.mxu1 %v1864_v39  ;;  %1602 = vmatprep.subr.bf16.mxu0 %v1888_v57  ;;  %v1903_v39 = vld [vmem:[#allocation10 + $0x28] sm:$0xff]   ;;  %v1912_v57 = vld [vmem:[#allocation11 + $0x30] sm:$0xff]  }
  0xff   :  { %578 = vmatpush1.bf16.msra.mxu1 %v1866_v40  ;;  %1603 = vmatpush3.bf16.msra.mxu0 %v1889_v58  ;;  %v1904_v40 = vld [vmem:[#allocation10 + $0x30] sm:$0xff]   ;;  %v1913_v58 = vld [vmem:[#allocation11 + $0x38] sm:$0xff]  }
 0x100   :  { %579 = vmatprep.subr.bf16.mxu1 %v1867_v41  ;;  %1604 = vmatprep.subr.bf16.mxu0 %v1890_v59  ;;  %v1905_v41 = vld [vmem:[#allocation10 + $0x38] sm:$0xff]   ;;  %v1914_v59 = vld [vmem:[#allocation13] sm:$0xff]  }
 0x103   :  { %580 = vmatpush1.bf16.msra.mxu1 %v1869_v42  ;;  %1605 = vmatpush3.bf16.msra.mxu0 %v1891_v60  ;;  %v1906_v42 = vld [vmem:[#allocation11] sm:$0xff]   ;;  %v1915_v60 = vld [vmem:[#allocation13 + $0x8] sm:$0xff]  }
 0x104   :  { %581 = vmatprep.subr.bf16.mxu1 %v1870_v43  ;;  %1606 = vmatprep.subr.bf16.mxu0 %v1892_v61  ;;  %v1907_v43 = vld [vmem:[#allocation11 + $0x8] sm:$0xff]   ;;  %v1916_v61 = vld [vmem:[#allocation13 + $0x10] sm:$0xff]  }
 0x107   :  { %582 = vmatpush1.bf16.msra.mxu1 %v1872_v44  ;;  %1607 = vmatpush3.bf16.msra.mxu0 %v1893_v62  ;;  %v1908_v44 = vld [vmem:[#allocation11 + $0x10] sm:$0xff]   ;;  %v1917_v62 = vld [vmem:[#allocation13 + $0x18] sm:$0xff]  }
 0x108   :  { %583 = vmatprep.subr.bf16.mxu1 %v1873_v45  ;;  %1608 = vmatprep.subr.bf16.mxu0 %v1894_v16  ;;  %v1909_v45 = vld [vmem:[#allocation11 + $0x18] sm:$0xff]   ;;  %v1927_v16 = vld [vmem:[#allocation14 + $0x28] sm:$0xff]  }
 0x10b   :  { %584 = vmatpush1.bf16.msra.mxu1 %v1875_v46  ;;  %1609 = vmatpush3.bf16.msra.mxu0 %v1895_v17  ;;  %v1910_v46 = vld [vmem:[#allocation11 + $0x20] sm:$0xff]   ;;  %v1551_v17 = vld [vmem:[%s2610_s14] ss:$0 sm:$0xff] }
 0x10c   :  { %585 = vmatprep.subr.bf16.mxu1 %v1876_v47  ;;  %1610 = vmatprep.subr.bf16.mxu0 %v1896_v18  ;;  %v1911_v47 = vld [vmem:[#allocation11 + $0x28] sm:$0xff]  }
 0x10f   :  { %586 = vmatpush1.bf16.msra.mxu1 %v1878_v48  ;;  %1611 = vmatpush3.bf16.msra.mxu0 %v1897_v19 }
 0x110   :  { %587 = vmatprep.subr.bf16.mxu1 %v1879_v49  ;;  %1672 = vmatprep.subr.bf16.mxu0 %v2219_v20  ;;  %v1525_v49 = vld [vmem:[%s2608_s12] ss:$0 sm:$0xff] }
 0x113   :  { %588 = vmatpush1.bf16.msra.mxu1 %v1881_v50 }
 0x114   :  { %1692 = vmatprep.subr.bf16.mxu1 %v2219_v20 }
 0x1c5   :  { %v342_v6 = vpop.f32.mrb[0].mxu0 }
 0x1c6   :  { %v343_v7 = vadd.f32 %v342_v6, %v221_v4  ;;  %v344_v8 = vpop.f32.mrb[1].mxu0 }
 0x1c7   :  { %v345_v9 = vadd.f32 %v344_v8, %v225_v5  ;;  %v346_v10 = vpop.f32.mrb[2].mxu0 }
 0x1c8   :  { %v349_v11 = vmax.f32 %v343_v7, 0.0  ;;  %v347_v12 = vpop.f32.mrb[3].mxu0  ;;  %v1921_v10 = vld [vmem:[#allocation13 + $0x38] sm:$0xff]  }
 0x1c9   :  { %v350_v13 = vmax.f32 %v345_v9, 0.0  ;;  %v1920_v9 = vld [vmem:[#allocation13 + $0x30] sm:$0xff]   ;;  %v1923_v12 = vld [vmem:[#allocation14 + $0x8] sm:$0xff]  }
 0x1ca   :  { %v384_v15 = vpack.c.bf16 %v349_v11, %v349_v11  ;;  %v1922_v11 = vld [vmem:[#allocation14] sm:$0xff]  }
 0x1cb   :  { %v385_v14 = vpack.c.bf16 %v350_v13, %v350_v13  ;;  %v1924_v13 = vld [vmem:[#allocation14 + $0x10] sm:$0xff]  }
 0x1cd   :  { %589 = vmatprep.mubr.bf16.mxu1 %v385_v14  ;;  %v1925_v14 = vld [vmem:[#allocation14 + $0x18] sm:$0xff]  }
 0x1ce   :  { %590 = vmatmul.mubr.bf16.vlgmr.msra.gmra.mrb[0].mxu1 %v384_v15  ;;  %v1926_v15 = vld [vmem:[#allocation14 + $0x20] sm:$0xff]  }
 0x1cf   :  { %1708 = vmatprep.mubr.msk.bf16.mxu1 %vm2220_vm0, %v2219_v20  ;;  %1693 = vmatpush3.bf16.msra.mxu1 %v1906_v42  ;;  %v1936_v42 = vld [vmem:[#allocation16 + $0x30] sm:$0xff]  }
 0x1d0   :  { %1694 = vmatprep.subr.bf16.mxu1 %v2219_v20 }
 0x1d3   :  { %1695 = vmatpush3.bf16.msra.mxu1 %v1907_v43  ;;  %v1937_v43 = vld [vmem:[#allocation16 + $0x38] sm:$0xff]  }
 0x1d4   :  { %1696 = vmatprep.subr.bf16.mxu1 %v2219_v20 }
 0x1d7   :  { %1697 = vmatpush3.bf16.msra.mxu1 %v1908_v44  ;;  %v1938_v44 = vld [vmem:[#allocation17] sm:$0xff]  }
 0x1d8   :  { %1698 = vmatprep.subr.bf16.mxu1 %v2219_v20 }
 0x1db   :  { %1699 = vmatpush3.bf16.msra.mxu1 %v1909_v45  ;;  %v1939_v45 = vld [vmem:[#allocation17 + $0x8] sm:$0xff]  }
 0x1dc   :  { %1700 = vmatprep.subr.bf16.mxu1 %v2219_v20 }
 0x1df   :  { %1701 = vmatpush3.bf16.msra.mxu1 %v1910_v46  ;;  %v1940_v46 = vld [vmem:[#allocation17 + $0x10] sm:$0xff]  }
 0x1e0   :  { %1702 = vmatprep.subr.bf16.mxu1 %v2219_v20 }
 0x1e3   :  { %1703 = vmatpush3.bf16.msra.mxu1 %v1911_v47  ;;  %v1941_v47 = vld [vmem:[#allocation17 + $0x18] sm:$0xff]  }
 0x1e4   :  { %1704 = vmatprep.subr.bf16.mxu1 %v2219_v20 }
 0x1e7   :  { %1705 = vmatpush3.bf16.msra.mxu1 %v1912_v57 }
 0x1e8   :  { %1706 = vmatprep.subr.bf16.mxu1 %v2219_v20 }
 0x1eb   :  { %1707 = vmatpush3.bf16.msra.mxu1 %v1913_v58  ;;  %v1944_v58 = vld [vmem:[#allocation17 + $0x30] sm:$0xff]  }
 0x1ec   :  { %1732 = vmatprep.subr.bf16.mxu1 %v2219_v20 }
 0x2a1   :  { %v591_v24 = vpop.f32.mrb[0].mxu1 }
 0x2a2   :  { %v592_v25 = vadd.f32 %v591_v24, %v390_v22  ;;  %v593_v26 = vpop.f32.mrb[1].mxu1 }
 0x2a3   :  { %v594_v27 = vadd.f32 %v593_v26, %v394_v23  ;;  %v595_v28 = vpop.f32.mrb[2].mxu1  ;;  %v1928_v26 = vld [vmem:[#allocation14 + $0x30] sm:$0xff]  }
 0x2a4   :  { %v598_v29 = vmax.f32 %v592_v25, 0.0  ;;  %v596_v30 = vpop.f32.mrb[3].mxu1  ;;  %v1930_v28 = vld [vmem:[#allocation16] sm:$0xff]  }
 0x2a5   :  { %v599_v31 = vmax.f32 %v594_v27, 0.0  ;;  %v1929_v27 = vld [vmem:[#allocation14 + $0x38] sm:$0xff]   ;;  %v1932_v30 = vld [vmem:[#allocation16 + $0x10] sm:$0xff]  }
 0x2a6   :  { %v633_v34 = vpack.c.bf16 %v598_v29, %v598_v29  ;;  %v1931_v29 = vld [vmem:[#allocation16 + $0x8] sm:$0xff]  }
 0x2a7   :  { %v634_v32 = vpack.c.bf16 %v599_v31, %v599_v31  ;;  %v1933_v31 = vld [vmem:[#allocation16 + $0x18] sm:$0xff]  }
 0x2a9   :  { %769 = vmatprep.mubr.bf16.mxu0 %v634_v32  ;;  %v1934_v32 = vld [vmem:[#allocation16 + $0x20] sm:$0xff]  }
 0x2aa   :  { %770 = vmatmul.mubr.bf16.vlgmr.msra.gmra.mrb[4].mxu0 %v633_v34  ;;  %v1560_v34 = vld [vmem:[%s2611_s15] ss:$0 sm:$0xff] }
 0x2ab   :  { %1673 = vmatpush3.bf16.msra.mxu0 %v1898_v33  ;;  %1688 = vmatprep.mubr.msk.bf16.mxu0 %vm2220_vm0, %v2219_v20  ;;  %v1935_v33 = vld [vmem:[#allocation16 + $0x28] sm:$0xff]  }
 0x2ac   :  { %1674 = vmatprep.subr.bf16.mxu0 %v2219_v20 }
 0x2af   :  { %1675 = vmatpush3.bf16.msra.mxu0 %v1899_v35 }
 0x2b0   :  { %1676 = vmatprep.subr.bf16.mxu0 %v2219_v20 }
 0x2b3   :  { %1677 = vmatpush3.bf16.msra.mxu0 %v1900_v36 }
 0x2b4   :  { %1678 = vmatprep.subr.bf16.mxu0 %v2219_v20 }
 0x2b7   :  { %1679 = vmatpush3.bf16.msra.mxu0 %v1901_v37 }
 0x2b8   :  { %1680 = vmatprep.subr.bf16.mxu0 %v2219_v20 }
 0x2bb   :  { %1681 = vmatpush3.bf16.msra.mxu0 %v1902_v38 }
 0x2bc   :  { %1682 = vmatprep.subr.bf16.mxu0 %v2219_v20 }
 0x2bf   :  { %1683 = vmatpush3.bf16.msra.mxu0 %v1903_v39 }
 0x2c0   :  { %1684 = vmatprep.subr.bf16.mxu0 %v2219_v20 }
 0x2c3   :  { %1685 = vmatpush3.bf16.msra.mxu0 %v1904_v40 }
 0x2c4   :  { %1686 = vmatprep.subr.bf16.mxu0 %v2219_v20 }
 0x2c7   :  { %1687 = vmatpush3.bf16.msra.mxu0 %v1905_v41 }
 0x2c8   :  { %1712 = vmatprep.subr.bf16.mxu0 %v2219_v20 }
 0x37d   :  { %v1612_v48 = vpop.f32.mrb[4].mxu0 }
 0x37e   :  { %v1613_v50 = vpop.f32.mrb[5].mxu0 }
 0x37f   :  { %v1614_v51 = vadd.f32 %v1613_v50, %v1612_v48  ;;  %v1615_v52 = vpop.f32.mrb[6].mxu0  ;;  %v1942_v48 = vld [vmem:[#allocation17 + $0x20] sm:$0xff]   ;;  %v1569_v50 = vld [vmem:[%s2612_s16] ss:$0 sm:$0xff] }
 0x380   :  { %v1616_v53 = vpop.f32.mrb[7].mxu0 }
 0x381   :  { %v772_v54 = vadd.f32 %v1614_v51, %v1525_v49  ;;  %v1943_v49 = vld [vmem:[#allocation17 + $0x28] sm:$0xff]  }
 0x383   :  { %v777_v55 = vmax.f32 %v772_v54, 0.0 }
 0x385   :  { %v795_v56 = vpack.c.bf16 %v777_v55, %v777_v55 }
 0x387   :  { %1689 = vmatmul.mubr.bf16.vlgmr.msra.gmra.mrb[8].mxu0 %v795_v56 }
 0x388   :  { %1728 = vmatprep.mubr.msk.bf16.mxu0 %vm2220_vm0, %v2219_v20  ;;  %1713 = vmatpush3.bf16.msra.mxu0 %v1914_v59  ;;  %v1945_v59 = vld [vmem:[#allocation17 + $0x38] sm:$0xff]  }
 0x389   :  { %1714 = vmatprep.subr.bf16.mxu0 %v2219_v20 }
 0x38c   :  { %1715 = vmatpush3.bf16.msra.mxu0 %v1915_v60  ;;  %v1578_v60 = vld [vmem:[%s2613_s17] ss:$0 sm:$0xff]  ;;  %s1463_s17 = sshll.u32 %s2221_s24, 4  ;;  %s1464_s17 = int_to_ptr.vmem [resolvable:$true] %s1463_s17 }
 0x38d   :  { %1716 = vmatprep.subr.bf16.mxu0 %v2219_v20  ;;  %s2168_s0 = scalar_lea.vmem %s1464_s17, 128  ;;  %p2173_p11 = scmp.lt.s32.totalorder %s1464_s17, %s1464_s17 }
 0x38e   :  { %p2169_p10 = scmp.ne.s32.totalorder %s1464_s17, %s2168_s0  ;;  %p2174_p12 = scmp.lt.s32.totalorder %s2168_s0, %s2168_s0 }
 0x390   :  { %1717 = vmatpush3.bf16.msra.mxu0 %v1916_v61  ;;  %p2175_p13 = por %p2174_p12, %p2173_p11 }
 0x391   :  { %1718 = vmatprep.subr.bf16.mxu0 %v2219_v20 }
 0x392   :  { %p2176_p0 = pnand %p2175_p13, %p2169_p10 }
 0x394   :  { %1719 = vmatpush3.bf16.msra.mxu0 %v1917_v62 }
 0x395   :  { %1720 = vmatprep.subr.bf16.mxu0 %v2219_v20 }
 0x398   :  { %1721 = vmatpush3.bf16.msra.mxu0 %v1918_v63 }
 0x399   :  { %1722 = vmatprep.subr.bf16.mxu0 %v2219_v20 }
 0x39c   :  { %1723 = vmatpush3.bf16.msra.mxu0 %v1919_v0 }
 0x39d   :  { %1724 = vmatprep.subr.bf16.mxu0 %v2219_v20 }
 0x3a0   :  { %1725 = vmatpush3.bf16.msra.mxu0 %v1920_v9 }
 0x3a1   :  { %1726 = vmatprep.subr.bf16.mxu0 %v2219_v20 }
 0x3a4   :  { %1727 = vmatpush3.bf16.msra.mxu0 %v1921_v10 }
 0x3a5   :  { %1752 = vmatprep.subr.bf16.mxu0 %v2219_v20 }
 0x45a   :  { %v884_v2 = vpop.f32.mrb[8].mxu0 }
 0x45b   :  { %v885_v3 = vadd.f32 %v1542_v1, %v884_v2  ;;  %v1690_v4 = vpop.f32.mrb[9].mxu0 }
 0x45c   :  { %v887_v5 = vpop.f32.mrb[10].mxu0  ;;  %v1587_v4 = vld [vmem:[%s2635_s5] ss:$0 sm:$0xff] }
 0x45d   :  { %v890_v6 = vmax.f32 %v885_v3, 0.0  ;;  %v1691_v7 = vpop.f32.mrb[11].mxu0 }
 0x45f   :  { %v908_v8 = vpack.c.bf16 %v890_v6, %v890_v6 }
 0x461   :  { %1709 = vmatmul.mubr.bf16.vlgmr.msra.gmra.mrb[4].mxu1 %v908_v8 }
 0x462   :  { %1748 = vmatprep.mubr.msk.bf16.mxu1 %vm2220_vm0, %v2219_v20  ;;  %1733 = vmatpush3.bf16.msra.mxu1 %v1922_v11 }
 0x463   :  { %1734 = vmatprep.subr.bf16.mxu1 %v2219_v20 }
 0x466   :  { %1735 = vmatpush3.bf16.msra.mxu1 %v1923_v12 }
 0x467   :  { %1736 = vmatprep.subr.bf16.mxu1 %v2219_v20 }
 0x46a   :  { %1737 = vmatpush3.bf16.msra.mxu1 %v1924_v13 }
 0x46b   :  { %1738 = vmatprep.subr.bf16.mxu1 %v2219_v20 }
 0x46e   :  { %1739 = vmatpush3.bf16.msra.mxu1 %v1925_v14 }
 0x46f   :  { %1740 = vmatprep.subr.bf16.mxu1 %v2219_v20 }
 0x472   :  { %1741 = vmatpush3.bf16.msra.mxu1 %v1926_v15 }
 0x473   :  { %1742 = vmatprep.subr.bf16.mxu1 %v2219_v20 }
 0x476   :  { %1743 = vmatpush3.bf16.msra.mxu1 %v1927_v16 }
 0x477   :  { %1744 = vmatprep.subr.bf16.mxu1 %v2219_v20 }
 0x47a   :  { %1745 = vmatpush3.bf16.msra.mxu1 %v1928_v26 }
 0x47b   :  { %1746 = vmatprep.subr.bf16.mxu1 %v2219_v20 }
 0x47e   :  { %1747 = vmatpush3.bf16.msra.mxu1 %v1929_v27 }
 0x47f   :  { %1772 = vmatprep.subr.bf16.mxu1 %v2219_v20 }
 0x534   :  { %v997_v18 = vpop.f32.mrb[4].mxu1 }
 0x535   :  { %v998_v19 = vadd.f32 %v1551_v17, %v997_v18  ;;  %v1710_v21 = vpop.f32.mrb[5].mxu1 }
 0x536   :  { %v1000_v22 = vpop.f32.mrb[6].mxu1 }
 0x537   :  { %v1003_v23 = vmax.f32 %v998_v19, 0.0  ;;  %v1711_v24 = vpop.f32.mrb[7].mxu1 }
 0x539   :  { %v1021_v25 = vpack.c.bf16 %v1003_v23, %v1003_v23 }
 0x53b   :  { %1729 = vmatmul.mubr.bf16.vlgmr.msra.gmra.mrb[12].mxu0 %v1021_v25 }
 0x53c   :  { %1768 = vmatprep.mubr.msk.bf16.mxu0 %vm2220_vm0, %v2219_v20  ;;  %1753 = vmatpush3.bf16.msra.mxu0 %v1930_v28 }
 0x53d   :  { %1754 = vmatprep.subr.bf16.mxu0 %v2219_v20 }
 0x540   :  { %1755 = vmatpush3.bf16.msra.mxu0 %v1931_v29 }
 0x541   :  { %1756 = vmatprep.subr.bf16.mxu0 %v2219_v20 }
 0x544   :  { %1757 = vmatpush3.bf16.msra.mxu0 %v1932_v30 }
 0x545   :  { %1758 = vmatprep.subr.bf16.mxu0 %v2219_v20 }
 0x548   :  { %1759 = vmatpush3.bf16.msra.mxu0 %v1933_v31 }
 0x549   :  { %1760 = vmatprep.subr.bf16.mxu0 %v2219_v20 }
 0x54c   :  { %1761 = vmatpush3.bf16.msra.mxu0 %v1934_v32 }
 0x54d   :  { %1762 = vmatprep.subr.bf16.mxu0 %v2219_v20 }
 0x550   :  { %1763 = vmatpush3.bf16.msra.mxu0 %v1935_v33 }
 0x551   :  { %1764 = vmatprep.subr.bf16.mxu0 %v2219_v20 }
 0x554   :  { %1765 = vmatpush3.bf16.msra.mxu0 %v1936_v42 }
 0x555   :  { %1766 = vmatprep.subr.bf16.mxu0 %v2219_v20 }
 0x558   :  { %1767 = vmatpush3.bf16.msra.mxu0 %v1937_v43 }
 0x60e   :  { %v1110_v35 = vpop.f32.mrb[12].mxu0 }
 0x60f   :  { %v1111_v36 = vadd.f32 %v1560_v34, %v1110_v35  ;;  %v1730_v37 = vpop.f32.mrb[13].mxu0 }
 0x610   :  { %v1113_v38 = vpop.f32.mrb[14].mxu0 }
 0x611   :  { %v1116_v39 = vmax.f32 %v1111_v36, 0.0  ;;  %v1731_v40 = vpop.f32.mrb[15].mxu0 }
 0x613   :  { %v1134_v41 = vpack.c.bf16 %v1116_v39, %v1116_v39 }
 0x615   :  { %1749 = vmatmul.mubr.bf16.vlgmr.msra.gmra.mrb[8].mxu1 %v1134_v41 }
 0x616   :  { %1788 = vmatprep.mubr.msk.bf16.mxu1 %vm2220_vm0, %v2219_v20  ;;  %1773 = vmatpush3.bf16.msra.mxu1 %v1938_v44 }
 0x617   :  { %1774 = vmatprep.subr.bf16.mxu1 %v2219_v20 }
 0x61a   :  { %1775 = vmatpush3.bf16.msra.mxu1 %v1939_v45 }
 0x61b   :  { %1776 = vmatprep.subr.bf16.mxu1 %v2219_v20 }
 0x61e   :  { %1777 = vmatpush3.bf16.msra.mxu1 %v1940_v46 }
 0x61f   :  { %1778 = vmatprep.subr.bf16.mxu1 %v2219_v20 }
 0x622   :  { %1779 = vmatpush3.bf16.msra.mxu1 %v1941_v47 }
 0x623   :  { %1780 = vmatprep.subr.bf16.mxu1 %v2219_v20 }
 0x626   :  { %1781 = vmatpush3.bf16.msra.mxu1 %v1942_v48 }
 0x627   :  { %1782 = vmatprep.subr.bf16.mxu1 %v2219_v20 }
 0x62a   :  { %1783 = vmatpush3.bf16.msra.mxu1 %v1943_v49 }
 0x62b   :  { %1784 = vmatprep.subr.bf16.mxu1 %v2219_v20 }
 0x62e   :  { %1785 = vmatpush3.bf16.msra.mxu1 %v1944_v58 }
 0x62f   :  { %1786 = vmatprep.subr.bf16.mxu1 %v2219_v20 }
 0x632   :  { %1787 = vmatpush3.bf16.msra.mxu1 %v1945_v59 }
 0x6e8   :  { %v1223_v51 = vpop.f32.mrb[8].mxu1 }
 0x6e9   :  { %v1224_v52 = vadd.f32 %v1569_v50, %v1223_v51  ;;  %v1750_v53 = vpop.f32.mrb[9].mxu1 }
 0x6ea   :  { %v1226_v54 = vpop.f32.mrb[10].mxu1 }
 0x6eb   :  { %v1229_v55 = vmax.f32 %v1224_v52, 0.0  ;;  %v1751_v56 = vpop.f32.mrb[11].mxu1 }
 0x6ed   :  { %v1247_v57 = vpack.c.bf16 %v1229_v55, %v1229_v55 }
 0x6ef   :  { %1769 = vmatmul.mubr.bf16.vlgmr.msra.gmra.mrb[16].mxu0 %v1247_v57 }
 0x7c2   :  { %v1336_v61 = vpop.f32.mrb[16].mxu0 }
 0x7c3   :  { %v1337_v62 = vadd.f32 %v1578_v60, %v1336_v61  ;;  %v1770_v63 = vpop.f32.mrb[17].mxu0 }
 0x7c4   :  { %v1339_v0 = vpop.f32.mrb[18].mxu0 }
 0x7c5   :  { %v1342_v1 = vmax.f32 %v1337_v62, 0.0  ;;  %v1771_v2 = vpop.f32.mrb[19].mxu0 }
 0x7c7   :  { %v1360_v3 = vpack.c.bf16 %v1342_v1, %v1342_v1 }
 0x7c9   :  { %1789 = vmatmul.mubr.bf16.vlgmr.msra.gmra.mrb[12].mxu1 %v1360_v3 }
 0x89c   :  { %v1449_v5 = vpop.f32.mrb[12].mxu1 }
 0x89d   :  { %v1450_v20 = vadd.f32 %v1587_v4, %v1449_v5  ;;  %v1790_v6 = vpop.f32.mrb[13].mxu1 }
 0x89e   :  { %v1452_v7 = vpop.f32.mrb[14].mxu1 }
 0x89f   :  { %1946 = vtanh.f32 %v1450_v20  ;;  %v1791_v8 = vpop.f32.mrb[15].mxu1 }
 0x8a9   :  { %v1947_v9 = vpop.eup %1946 }
 0x8aa   :  { %1456 = vst [vmem:[#allocation19] sm:$0xff] %v1947_v9 }
 0x8ab   :  { %2179 = shalt.err (!%p2176_p0)
}
 0x8ac   :  { %s2636_s4 = sld [smem:[#allocation32_spill]] }
 0x8b2   :  { %s2180_s22 = scalar_lea.hbm %s2636_s4, 128 }
 0x8b3   :  { %p2181_p1 = scmp.ne.s32.totalorder %s2636_s4, %s2180_s22  ;;  %p2184_p2 = scmp.lt.u32.totalorder %s2180_s22, %s2636_s4 }
 0x8b5   :  { %p2186_p3 = pnand %p2184_p2, %p2181_p1 }
 0x8b7   :  { %2189 = shalt.err (!%p2186_p3)
}
 0x8b8   :  { %1466 = dma.vmem_to_hbm [thread:$0]  %s1464_s17, 128, %s2636_s4, [#allocation4]  }
 0x8b9   :  { %2202 = dma.done.wait [#allocation4], 128  }
 0x8ba   :  { %2203 = vsyncadd [#allocation4], 4294967168 }
 0x8bb   :  { %1470 = vsyncpa [#allocation3], 1 }
 0x8bc   :  { %1471 = vsyncpa [#allocation6], 1 }
 0x8bd   :  { %1472 = vsyncpa [#allocation9], 1 }
 0x8be   :  { %1473 = vsyncpa [#allocation12], 1 }
 0x8bf   :  { %1474 = vsyncpa [#allocation15], 1 }
 0x8c0   :  { %1475 = vsyncpa [#allocation18], 1 }
 0x8c1   :  { %1476 = vsyncpa [#allocation4], 1 }

</bundles_post_ra>
